<compile_context>
chip_gen: v5e
topology: v5e:2x2
jax: 0.10.0
libtpu: 0.0.40
codegen_flags: <defaults>
</compile_context>

<pallas_src>
import math

import jax
import jax.numpy as jnp
from jax.experimental import pallas as pl
from jax.experimental.pallas import tpu as pltpu

# ----- deterministic "parameters" from the module's __init__ -----------------
SCALE = 10000.0
MIN_SGNL = 100.0
MAX_SGNL = 100000.0
NOISE = None  # default: no Poisson noise augmentation

LOGSCALE = math.log10(SCALE)
LOGMIN = math.log10(MIN_SGNL)
LOGMAX = math.log10(MAX_SGNL)
INV_LN10 = 1.0 / math.log(10.0)
# tanh((log10(z) - logscale)/logscale) == tanh(ln(z) * COEF - 1.0)
COEF = INV_LN10 / LOGSCALE

LANES = 128
MAX_BLOCK_ROWS = 2048  # 2048 * 128 * 4 B = 1 MiB per buffer (double-buffered)


# ----------------------------- kernels ---------------------------------------
def _zn_kernel(z_ref, zn_ref):
    # Lane-dense elementwise hot path: one fused mul-sub + EUP log/tanh.
    zn_ref[...] = jnp.tanh(jnp.log(z_ref[...]) * COEF - 1.0)


def _make_bit_kernel(lo_count, hi_count):
    inv_lo = 1.0 / float(lo_count)
    inv_hi = 1.0 / float(hi_count)

    def _bit_kernel(zlo_ref, zhi_ref, bit_ref):
        # Tiny quartile-error reduction on the pre-selected rows.
        a = jnp.log(zlo_ref[...]) * INV_LN10          # log10 of bottom-quartile rows
        b = jnp.log(zhi_ref[...]) * INV_LN10          # log10 of top-decile rows
        lo = jnp.sum(jnp.maximum(a - LOGMIN, 0.0)) * inv_lo
        hi = jnp.sum(jnp.maximum(LOGMAX - b, 0.0)) * inv_hi
        bit_ref[...] = jnp.reshape(lo + hi, (1, 1))

    return _bit_kernel


# ----------------------------- wrapper ----------------------------------------
def inst_nrm_simple(z, noise=NOISE, key=None):
    """Pallas implementation of InstNrmSimple.forward. z: (N, D) float32, positive."""
    if noise is not None:
        # TODO(synk): torch.poisson on negative rates is undefined; rates clamped to 0 here.
        k1, k2 = jax.random.split(key)
        rate = noise[0] * jnp.ones_like(z) + noise[1] * jax.random.normal(k1, z.shape)
        z = z + jax.random.poisson(k2, jnp.maximum(rate, 0.0)).astype(z.dtype)

    z = z.astype(jnp.float32)
    n, d = z.shape
    lo_p = n // 4
    hi_p = n // 10
    assert lo_p > 0 and hi_p > 0, "need n >= 10 (reference produces NaN otherwise)"

    # ---- partial selection (plain-JAX glue; log10 monotone => same rows as the
    #      reference's sort of log10(Z); order within the slice is irrelevant
    #      because only the mean is taken). ------------------------------------
    # TODO(synk): column-wise top-k/sort has no clean Pallas/Mosaic lowering.
    zt = z.T                                            # (d, n)
    z_lo = (-jax.lax.top_k(-zt, lo_p)[0]).T             # (lo_p, d) smallest per column
    z_hi = jax.lax.top_k(zt, hi_p)[0].T                 # (hi_p, d) largest per column

    # ---- lane-dense, row-tiled elementwise standardization --------------------
    total = n * d
    rows = pl.cdiv(total, LANES)
    block_rows = min(MAX_BLOCK_ROWS, ((rows + 7) // 8) * 8)  # multiple of 8
    padded_rows = pl.cdiv(rows, block_rows) * block_rows

    flat = z.reshape(-1)
    pad_amt = padded_rows * LANES - total
    if pad_amt:
        # pad value SCALE -> tanh(0) = 0; padded tail is sliced off below.
        flat = jnp.concatenate(
            [flat, jnp.full((pad_amt,), SCALE, dtype=jnp.float32)]
        )
    slab = flat.reshape(padded_rows, LANES)

    zn_slab = pl.pallas_call(
        _zn_kernel,
        grid=(padded_rows // block_rows,),
        in_specs=[pl.BlockSpec((block_rows, LANES), lambda i: (i, 0))],
        out_specs=pl.BlockSpec((block_rows, LANES), lambda i: (i, 0)),
        out_shape=jax.ShapeDtypeStruct((padded_rows, LANES), jnp.float32),
        compiler_params=pltpu.CompilerParams(dimension_semantics=("parallel",)),
    )(slab)
    zn = zn_slab.reshape(-1)[:total].reshape(n, d)

    # ---- tiny reduction kernel on only the rows that matter -------------------
    # Block shapes equal the full (small) array shapes, so no (8,128) constraint.
    bit = pl.pallas_call(
        _make_bit_kernel(lo_p * d, hi_p * d),
        grid=(1,),
        in_specs=[
            pl.BlockSpec((lo_p, d), lambda i: (0, 0)),
            pl.BlockSpec((hi_p, d), lambda i: (0, 0)),
        ],
        out_specs=pl.BlockSpec((1, 1), lambda i: (0, 0)),
        out_shape=jax.ShapeDtypeStruct((1, 1), jnp.float32),
    )(z_lo, z_hi)

    return zn, bit[0, 0]


# ----------------------------- reference --------------------------------------
def _reference(z):
    """Pure-JAX transcription of the PyTorch forward (noise=None)."""
    zlog = jnp.log10(z)
    o = jnp.sort(zlog, axis=0)
    hi_p = o.shape[0] // 10
    lo_p = o.shape[0] // 4
    a = o[:lo_p, :]
    b = o[-hi_p:, :]
    lo = jnp.mean(jnp.maximum(a - LOGMIN, 0.0))
    hi = jnp.mean(jnp.maximum(LOGMAX - b, 0.0))
    zn = jnp.tanh((zlog - LOGSCALE) / LOGSCALE)
    return zn, lo + hi


if __name__ == "__main__":
    key = jax.random.PRNGKey(0)
    N, D = 64, 16  # 64 cells x 16 bits -> lo_p = 16, hi_p = 6
    z = jax.random.uniform(key, (N, D), minval=10.0, maxval=50000.0, dtype=jnp.float32)

    zn, bit_cnst = inst_nrm_simple(z)
    jax.block_until_ready((zn, bit_cnst))

    zn_ref, bit_ref = _reference(z)
    assert zn.shape == (N, D) and zn.dtype == jnp.float32
    assert jnp.allclose(zn, zn_ref, atol=5e-3, rtol=5e-3), "Zn mismatch"
    assert jnp.allclose(bit_cnst, bit_ref, atol=5e-3, rtol=5e-3), "bit_cnst mismatch"

    print("KERNEL_OK")
</pallas_src>

<mosaic_0001>
module attributes {stable_mosaic.version = 11 : i64} {
  func.func @_zn_kernel(%arg0: i32, %arg1: memref<8x128xf32, #tpu.memory_space<vmem>>, %arg2: memref<8x128xf32, #tpu.memory_space<vmem>>) attributes {dimension_semantics = [#tpu.dimension_semantics<parallel>], iteration_bounds = array<i64: 1>, scalar_prefetch = 0 : i64, scratch_operands = 0 : i64, tpu.core_type = #tpu.core_type<tc>, window_params = [{transform_indices = @transform_0, window_bounds = array<i64: 8, 128>}, {transform_indices = @transform_1, window_bounds = array<i64: 8, 128>}]} {
    %c0 = arith.constant 0 : index
    %c0_0 = arith.constant 0 : index
    %0 = vector.load %arg1[%c0, %c0_0] : memref<8x128xf32, #tpu.memory_space<vmem>>, vector<8x128xf32>
    %1 = math.log %0 : vector<8x128xf32>
    %cst = arith.constant 0.108573623 : f32
    %2 = vector.broadcast %cst : f32 to vector<8x128xf32>
    %3 = arith.mulf %1, %2 : vector<8x128xf32>
    %cst_1 = arith.constant 1.000000e+00 : f32
    %4 = vector.broadcast %cst_1 : f32 to vector<8x128xf32>
    %5 = arith.subf %3, %4 : vector<8x128xf32>
    %6 = math.tanh %5 : vector<8x128xf32>
    %c0_2 = arith.constant 0 : index
    %c0_3 = arith.constant 0 : index
    %7 = vector.load %arg2[%c0_2, %c0_3] : memref<8x128xf32, #tpu.memory_space<vmem>>, vector<8x128xf32>
    tpu.vector_store %arg2[%c0_2, %c0_3], %6 {strides = array<i32>} : memref<8x128xf32, #tpu.memory_space<vmem>>, vector<8x128xf32>,
    return
  }
  func.func @transform_0(%arg0: i32) -> (i32, i32) {
    %c0_i32 = arith.constant 0 : i32
    %c0_i32_0 = arith.constant 0 : i32
    return %arg0, %c0_i32 : i32, i32
  }
  func.func @transform_1(%arg0: i32) -> (i32, i32) {
    %c0_i32 = arith.constant 0 : i32
    %c0_i32_0 = arith.constant 0 : i32
    return %arg0, %c0_i32 : i32, i32
  }
}

</mosaic_0001>

<bundles_post_ra>
// kernel: tpu_custom_call.1
= control target key start
LH: loop header
LB: loop body
LE: loop exit
PB: predicated region body
PF: predicated region fallthrough
CT: control target
= control target key end

     0   :  { %6 = vsyncpa [#allocation3], 0  ;;  %s124_s0 = inlined_call_operand.hbm [shape: f32[8,128], index: 0, kind: input, shape index: {}]   ;;  %s125_s1 = inlined_call_operand.hbm [shape: f32[8,128], index: 1, kind: output, shape index: {}]  }
   0x1   :  { %7 = vsyncpa [#allocation4], 0  ;;  %s13_s8 = sshll.u32 %s124_s0, 4  ;;  %s106_s9 = smov [#allocation2]   ;;  %s14_s8 = int_to_ptr.hbm [resolvable:$true] %s13_s8 }
   0x2   :  { %s15_s10 = sshll.u32 %s106_s9, 4  ;;  %s16_s10 = int_to_ptr.vmem [resolvable:$true] %s15_s10 }
   0x3   :  { %18 = dma.hbm_to_vmem [thread:$0]  %s14_s8, 128, %s16_s10, [#allocation3]  }
   0x4   :  { %102 = dma.done.wait [#allocation3], 128  }
   0x5   :  { %103 = vsyncadd [#allocation3], 4294967168  ;;  %v23_v0 = vld [vmem:[#allocation2] sm:$0xff]  ;;  %s107_s11 = smov [#allocation5]   ;;  %s37_s0 = sshll.u32 %s125_s1, 4  ;;  %s38_s0 = int_to_ptr.hbm [resolvable:$true] %s37_s0 }
   0x6   :  { %50 = vlog2.f32 %v23_v0  ;;  %s35_s12 = sshll.u32 %s107_s11, 4  ;;  %s36_s12 = int_to_ptr.vmem [resolvable:$true] %s35_s12 }
   0xc   :  { %v51_v1 = vpop.eup %50 }
   0xd   :  { %v25_v2 = vmul.f32 0.6931472, %v51_v1 }
   0xf   :  { %v26_v3 = vmul.f32 0.10857362, %v25_v2 }
  0x11   :  { %v47_v4 = vadd.f32 -1.0, %v26_v3 }
  0x13   :  { %52 = vtanh.f32 %v47_v4 }
  0x19   :  { %v53_v5 = vpop.eup %52 }
  0x1a   :  { %29 = vst [vmem:[#allocation5] sm:$0xff] %v53_v5 }
  0x1b   :  { %40 = dma.vmem_to_hbm [thread:$0]  %s36_s12, 128, %s38_s0, [#allocation4]  }
  0x1c   :  { %104 = dma.done.wait [#allocation4], 128  }
  0x1d   :  { %105 = vsyncadd [#allocation4], 4294967168 }
  0x1e   :  { %45 = vsyncpa [#allocation3], 1 }
  0x1f   :  { %46 = vsyncpa [#allocation4], 1 }

</bundles_post_ra>
